<compile_context>
chip_gen: v7x
topology: tpu7x:2x2x1
jax: 0.10.0
libtpu: 0.0.40
codegen_flags: <defaults>
</compile_context>

<pallas_src>
import functools

import jax
import jax.numpy as jnp
from jax.experimental import pallas as pl
from jax.experimental.pallas import tpu as pltpu

LANES = 128
MAX_BLOCK_ROWS = 8192   # 8192 x 128 f32 = 4 MiB per input tile per buffer
NUM_CORES = 2           # leading "parallel" grid axis (2 TCs on v7x; harmless on v5e/v6e)


def _focal_loss_kernel(x_ref, t_ref, bce_acc, w_acc, *,
                       gamma, eps, blocks_per_core, block_elems, n_valid, mask_needed):
    c = pl.program_id(0)   # core / parallel axis
    i = pl.program_id(1)   # sequential streaming axis

    @pl.when(i == 0)
    def _():
        bce_acc[...] = jnp.zeros_like(bce_acc)
        w_acc[...] = jnp.zeros_like(w_acc)

    x = x_ref[...].astype(jnp.float32)
    t = t_ref[...].astype(jnp.float32)

    # e = exp(-|x|); stable softplus(x) = max(x, 0) + log1p(e)    (2 EUP ops total)
    e = jnp.exp(-jnp.abs(x))
    sp = jnp.maximum(x, 0.0) + jnp.log1p(e)

    # BCE with torch's -100 clamp on each log term:
    #   A = min(sp - x, 100) = -clamp(log(sigmoid(x)), -100)
    #   B = min(sp,     100) = -clamp(log(1 - sigmoid(x)), -100)
    #   bce = t*A + (1-t)*B = B + t*(A - B)
    a = jnp.minimum(sp - x, 100.0)
    b = jnp.minimum(sp, 100.0)
    bce = b + t * (a - b)

    # Focal weight: (1 - clip(p, eps, 1-eps))**gamma == clip(1-p, eps, 1-eps)**gamma,
    # with 1 - sigmoid(x) = where(x >= 0, e, 1) / (1 + e)  (reuses e; exact divide).
    one_minus_p = jnp.where(x >= 0.0, e, 1.0) / (1.0 + e)
    base = jnp.clip(one_minus_p, eps, 1.0 - eps)
    if float(gamma) == float(int(gamma)) and 1 <= int(gamma) <= 4:
        w = base
        for _ in range(int(gamma) - 1):
            w = w * base
    else:
        w = base ** gamma

    if mask_needed:
        linear = c * blocks_per_core + i
        first_partial = n_valid // block_elems  # first linear block containing any padding

        @pl.when(linear < first_partial)
        def _():
            bce_acc[0] += bce.reshape(-1, 8, LANES).sum(axis=0)
            w_acc[0] += w.reshape(-1, 8, LANES).sum(axis=0)

        @pl.when(linear >= first_partial)
        def _():
            row = jax.lax.broadcasted_iota(jnp.int32, x.shape, 0)
            lane = jax.lax.broadcasted_iota(jnp.int32, x.shape, 1)
            gidx = linear * block_elems + row * LANES + lane
            valid = gidx < n_valid
            bce_m = jnp.where(valid, bce, 0.0)
            w_m = jnp.where(valid, w, 0.0)
            bce_acc[0] += bce_m.reshape(-1, 8, LANES).sum(axis=0)
            w_acc[0] += w_m.reshape(-1, 8, LANES).sum(axis=0)
    else:
        bce_acc[0] += bce.reshape(-1, 8, LANES).sum(axis=0)
        w_acc[0] += w.reshape(-1, 8, LANES).sum(axis=0)


def focal_loss(x, target, gamma=2.0, eps=1e-7):
    n = int(x.size)
    assert int(target.size) == n and n > 0

    rows = -(-n // LANES)
    blocks_per_core = max(1, -(-rows // (NUM_CORES * MAX_BLOCK_ROWS)))
    block_rows = -(-rows // (NUM_CORES * blocks_per_core))
    block_rows = max(8, min(MAX_BLOCK_ROWS, ((block_rows + 7) // 8) * 8))
    block_elems = block_rows * LANES
    total_blocks = NUM_CORES * blocks_per_core
    n_pad = total_blocks * block_elems

    xf = jnp.reshape(x, (-1,))
    tf = jnp.reshape(target, (-1,))
    if n_pad != n:
        xf = jnp.pad(xf, (0, n_pad - n))
        tf = jnp.pad(tf, (0, n_pad - n))
    x2 = xf.reshape(total_blocks * block_rows, LANES)
    t2 = tf.reshape(total_blocks * block_rows, LANES)

    mask_needed = bool(n_pad != n)

    kernel = functools.partial(
        _focal_loss_kernel,
        gamma=float(gamma), eps=float(eps),
        blocks_per_core=blocks_per_core, block_elems=block_elems,
        n_valid=n, mask_needed=mask_needed)

    bce_part, w_part = pl.pallas_call(
        kernel,
        out_shape=(jax.ShapeDtypeStruct((NUM_CORES, 8, LANES), jnp.float32),
                   jax.ShapeDtypeStruct((NUM_CORES, 8, LANES), jnp.float32)),
        grid=(NUM_CORES, blocks_per_core),
        in_specs=[
            pl.BlockSpec((block_rows, LANES), lambda c, i: (c * blocks_per_core + i, 0)),
            pl.BlockSpec((block_rows, LANES), lambda c, i: (c * blocks_per_core + i, 0)),
        ],
        out_specs=(
            pl.BlockSpec((1, 8, LANES), lambda c, i: (c, 0, 0)),
            pl.BlockSpec((1, 8, LANES), lambda c, i: (c, 0, 0)),
        ),
        compiler_params=pltpu.CompilerParams(
            dimension_semantics=("parallel", "arbitrary"),
            vmem_limit_bytes=32 * 1024 * 1024),
    )(x2, t2)

    inv_n = 1.0 / float(n)
    # mean(BCE) * mean(focal weight)  ==  (bce.mean() * weight).mean()
    return (jnp.sum(bce_part) * inv_n) * (jnp.sum(w_part) * inv_n)


def _focal_loss_ref(x, target, gamma=2.0, eps=1e-7):
    # Mirrors torch: sigmoid -> clamped-log BCE (mean) -> * (1 - clamp(p))**gamma -> mean
    p = jax.nn.sigmoid(x).reshape(-1).astype(jnp.float32)
    t = target.reshape(-1).astype(jnp.float32)
    log_p = jnp.maximum(jnp.log(p), -100.0)
    log_1mp = jnp.maximum(jnp.log1p(-p), -100.0)
    bce = jnp.mean(-(t * log_p + (1.0 - t) * log_1mp))
    pc = jnp.clip(p, eps, 1.0 - eps)
    return jnp.mean(bce * (1.0 - pc) ** gamma)


if __name__ == "__main__":
    root = jax.random.PRNGKey(0)
    k1, k2, k3, k4, k5, k6 = jax.random.split(root, 6)

    # Test 1: primary small NCHW-like shape (module has no parameters), no padding path.
    x1 = jax.random.normal(k1, (2, 4, 16, 16), dtype=jnp.float32)
    t1 = (jax.random.uniform(k2, (2, 4, 16, 16)) > 0.5).astype(jnp.float32)
    out1 = jax.block_until_ready(focal_loss(x1, t1, gamma=2.0, eps=1e-7))
    ref1 = _focal_loss_ref(x1, t1, gamma=2.0, eps=1e-7)
    assert jnp.allclose(out1, ref1, rtol=1e-5, atol=1e-6), (out1, ref1)

    # Test 2: size not a multiple of the tile granularity -> padding-masked block on the
    # second core; bf16 target passed through unwidened (0/1 are exact in bf16).
    x2 = jax.random.normal(k3, (2, 4, 30, 30), dtype=jnp.float32)
    t2 = (jax.random.uniform(k4, (2, 4, 30, 30)) > 0.5).astype(jnp.float32)
    out2 = jax.block_until_ready(
        focal_loss(x2, t2.astype(jnp.bfloat16), gamma=2.0, eps=1e-7))
    ref2 = _focal_loss_ref(x2, t2, gamma=2.0, eps=1e-7)
    assert jnp.allclose(out2, ref2, rtol=1e-5, atol=1e-6), (out2, ref2)

    # Test 3: tiny input (< one lane row) -> partial block on core 0 and a fully-padded
    # block on core 1 (exercises the general padding mask).
    x3 = jax.random.normal(k5, (1, 1, 5, 7), dtype=jnp.float32)
    t3 = (jax.random.uniform(k6, (1, 1, 5, 7)) > 0.5).astype(jnp.float32)
    out3 = jax.block_until_ready(focal_loss(x3, t3, gamma=2.0, eps=1e-7))
    ref3 = _focal_loss_ref(x3, t3, gamma=2.0, eps=1e-7)
    assert jnp.allclose(out3, ref3, rtol=1e-5, atol=1e-6), (out3, ref3)

    print("KERNEL_OK")
</pallas_src>

<mosaic_0001>
module attributes {stable_mosaic.version = 11 : i64} {
  func.func @_focal_loss_kernel(%arg0: i32, %arg1: i32, %arg2: memref<8x128xf32, #tpu.memory_space<vmem>>, %arg3: memref<8x128xf32, #tpu.memory_space<vmem>>, %arg4: memref<1x8x128xf32, #tpu.memory_space<vmem>>, %arg5: memref<1x8x128xf32, #tpu.memory_space<vmem>>) attributes {dimension_semantics = [#tpu.dimension_semantics<parallel>, #tpu.dimension_semantics<arbitrary>], iteration_bounds = array<i64: 2, 1>, scalar_prefetch = 0 : i64, scratch_operands = 0 : i64, tpu.core_type = #tpu.core_type<tc>, window_params = [{transform_indices = @transform_0, window_bounds = array<i64: 8, 128>}, {transform_indices = @transform_1, window_bounds = array<i64: 8, 128>}, {transform_indices = @transform_2, window_bounds = array<i64: 1, 8, 128>}, {transform_indices = @transform_3, window_bounds = array<i64: 1, 8, 128>}]} {
    %c0_i32 = arith.constant 0 : i32
    %0 = arith.cmpi eq, %arg1, %c0_i32 : i32
    %1 = arith.extui %0 : i1 to i32
    %c0_i32_0 = arith.constant 0 : i32
    %2 = arith.cmpi ne, %1, %c0_i32_0 : i32
    scf.if %2 {
      %cst_26 = arith.constant 0.000000e+00 : f32
      %49 = vector.broadcast %cst_26 : f32 to vector<1x8x128xf32>
      %c0_27 = arith.constant 0 : index
      %c0_28 = arith.constant 0 : index
      %c0_29 = arith.constant 0 : index
      %50 = vector.load %arg4[%c0_27, %c0_28, %c0_29] : memref<1x8x128xf32, #tpu.memory_space<vmem>>, vector<1x8x128xf32>
      tpu.vector_store %arg4[%c0_27, %c0_28, %c0_29], %49 {strides = array<i32>} : memref<1x8x128xf32, #tpu.memory_space<vmem>>, vector<1x8x128xf32>,
      %cst_30 = arith.constant 0.000000e+00 : f32
      %51 = vector.broadcast %cst_30 : f32 to vector<1x8x128xf32>
      %c0_31 = arith.constant 0 : index
      %c0_32 = arith.constant 0 : index
      %c0_33 = arith.constant 0 : index
      %52 = vector.load %arg5[%c0_31, %c0_32, %c0_33] : memref<1x8x128xf32, #tpu.memory_space<vmem>>, vector<1x8x128xf32>
      tpu.vector_store %arg5[%c0_31, %c0_32, %c0_33], %51 {strides = array<i32>} : memref<1x8x128xf32, #tpu.memory_space<vmem>>, vector<1x8x128xf32>,
    } else {
    }
    %c0 = arith.constant 0 : index
    %c0_1 = arith.constant 0 : index
    %3 = vector.load %arg2[%c0, %c0_1] : memref<8x128xf32, #tpu.memory_space<vmem>>, vector<8x128xf32>
    %c0_2 = arith.constant 0 : index
    %c0_3 = arith.constant 0 : index
    %4 = vector.load %arg3[%c0_2, %c0_3] : memref<8x128xf32, #tpu.memory_space<vmem>>, vector<8x128xf32>
    %5 = math.absf %3 : vector<8x128xf32>
    %cst = arith.constant 0.000000e+00 : f32
    %6 = vector.broadcast %cst : f32 to vector<8x128xf32>
    %7 = arith.subf %6, %5 : vector<8x128xf32>
    %8 = math.exp %7 : vector<8x128xf32>
    %cst_4 = arith.constant 0.000000e+00 : f32
    %9 = vector.broadcast %cst_4 : f32 to vector<8x128xf32>
    %10 = arith.maximumf %3, %9 : vector<8x128xf32>
    %11 = math.log1p %8 : vector<8x128xf32>
    %12 = arith.addf %10, %11 : vector<8x128xf32>
    %13 = arith.subf %12, %3 : vector<8x128xf32>
    %cst_5 = arith.constant 1.000000e+02 : f32
    %14 = vector.broadcast %cst_5 : f32 to vector<8x128xf32>
    %15 = arith.minimumf %13, %14 : vector<8x128xf32>
    %cst_6 = arith.constant 1.000000e+02 : f32
    %16 = vector.broadcast %cst_6 : f32 to vector<8x128xf32>
    %17 = arith.minimumf %12, %16 : vector<8x128xf32>
    %18 = arith.subf %15, %17 : vector<8x128xf32>
    %19 = arith.mulf %4, %18 : vector<8x128xf32>
    %20 = arith.addf %17, %19 : vector<8x128xf32>
    %cst_7 = arith.constant 0.000000e+00 : f32
    %21 = vector.broadcast %cst_7 : f32 to vector<8x128xf32>
    %22 = arith.cmpf oge, %3, %21 : vector<8x128xf32>
    %cst_8 = arith.constant 1.000000e+00 : f32
    %23 = vector.broadcast %cst_8 : f32 to vector<8x128xf32>
    %24 = arith.select %22, %8, %23 : vector<8x128xi1>, vector<8x128xf32>
    %cst_9 = arith.constant 1.000000e+00 : f32
    %25 = vector.broadcast %cst_9 : f32 to vector<8x128xf32>
    %26 = arith.addf %25, %8 : vector<8x128xf32>
    %27 = arith.divf %24, %26 : vector<8x128xf32>
    %cst_10 = arith.constant 1.000000e-07 : f32
    %cst_11 = arith.constant 0.99999988 : f32
    %28 = vector.broadcast %cst_10 : f32 to vector<8x128xf32>
    %29 = arith.maximumf %28, %27 : vector<8x128xf32>
    %30 = vector.broadcast %cst_11 : f32 to vector<8x128xf32>
    %31 = arith.minimumf %30, %29 : vector<8x128xf32>
    %32 = arith.mulf %31, %31 : vector<8x128xf32>
    %c0_12 = arith.constant 0 : index
    %c0_13 = arith.constant 0 : index
    %c0_14 = arith.constant 0 : index
    %33 = vector.load %arg4[%c0_12, %c0_13, %c0_14] : memref<1x8x128xf32, #tpu.memory_space<vmem>>, vector<1x8x128xf32>
    %34 = vector.shape_cast %33 : vector<1x8x128xf32> to vector<8x128xf32>
    %35 = vector.shape_cast %20 : vector<8x128xf32> to vector<1x8x128xf32>
    %cst_15 = arith.constant dense<0.000000e+00> : vector<8x128xf32>
    %36 = vector.multi_reduction <add>, %35, %cst_15 [0] : vector<1x8x128xf32> to vector<8x128xf32>
    %37 = arith.addf %34, %36 : vector<8x128xf32>
    %c0_16 = arith.constant 0 : index
    %c0_17 = arith.constant 0 : index
    %c0_18 = arith.constant 0 : index
    %38 = vector.load %arg4[%c0_16, %c0_17, %c0_18] : memref<1x8x128xf32, #tpu.memory_space<vmem>>, vector<1x8x128xf32>
    %39 = vector.shape_cast %38 : vector<1x8x128xf32> to vector<8x128xf32>
    %40 = vector.shape_cast %37 : vector<8x128xf32> to vector<1x8x128xf32>
    tpu.vector_store %arg4[%c0_16, %c0_17, %c0_18], %40 {strides = array<i32>} : memref<1x8x128xf32, #tpu.memory_space<vmem>>, vector<1x8x128xf32>,
    %c0_19 = arith.constant 0 : index
    %c0_20 = arith.constant 0 : index
    %c0_21 = arith.constant 0 : index
    %41 = vector.load %arg5[%c0_19, %c0_20, %c0_21] : memref<1x8x128xf32, #tpu.memory_space<vmem>>, vector<1x8x128xf32>
    %42 = vector.shape_cast %41 : vector<1x8x128xf32> to vector<8x128xf32>
    %43 = vector.shape_cast %32 : vector<8x128xf32> to vector<1x8x128xf32>
    %cst_22 = arith.constant dense<0.000000e+00> : vector<8x128xf32>
    %44 = vector.multi_reduction <add>, %43, %cst_22 [0] : vector<1x8x128xf32> to vector<8x128xf32>
    %45 = arith.addf %42, %44 : vector<8x128xf32>
    %c0_23 = arith.constant 0 : index
    %c0_24 = arith.constant 0 : index
    %c0_25 = arith.constant 0 : index
    %46 = vector.load %arg5[%c0_23, %c0_24, %c0_25] : memref<1x8x128xf32, #tpu.memory_space<vmem>>, vector<1x8x128xf32>
    %47 = vector.shape_cast %46 : vector<1x8x128xf32> to vector<8x128xf32>
    %48 = vector.shape_cast %45 : vector<8x128xf32> to vector<1x8x128xf32>
    tpu.vector_store %arg5[%c0_23, %c0_24, %c0_25], %48 {strides = array<i32>} : memref<1x8x128xf32, #tpu.memory_space<vmem>>, vector<1x8x128xf32>,
    return
  }
  func.func @transform_0(%arg0: i32, %arg1: i32) -> (i32, i32) {
    %c1_i32 = arith.constant 1 : i32
    %0 = arith.muli %arg0, %c1_i32 : i32
    %1 = arith.addi %0, %arg1 : i32
    %c0_i32 = arith.constant 0 : i32
    %c0_i32_0 = arith.constant 0 : i32
    return %1, %c0_i32 : i32, i32
  }
  func.func @transform_1(%arg0: i32, %arg1: i32) -> (i32, i32) {
    %c1_i32 = arith.constant 1 : i32
    %0 = arith.muli %arg0, %c1_i32 : i32
    %1 = arith.addi %0, %arg1 : i32
    %c0_i32 = arith.constant 0 : i32
    %c0_i32_0 = arith.constant 0 : i32
    return %1, %c0_i32 : i32, i32
  }
  func.func @transform_2(%arg0: i32, %arg1: i32) -> (i32, i32, i32) {
    %c0_i32 = arith.constant 0 : i32
    %c0_i32_0 = arith.constant 0 : i32
    %c0_i32_1 = arith.constant 0 : i32
    return %arg0, %c0_i32, %c0_i32_0 : i32, i32, i32
  }
  func.func @transform_3(%arg0: i32, %arg1: i32) -> (i32, i32, i32) {
    %c0_i32 = arith.constant 0 : i32
    %c0_i32_0 = arith.constant 0 : i32
    %c0_i32_1 = arith.constant 0 : i32
    return %arg0, %c0_i32, %c0_i32_0 : i32, i32, i32
  }
}

</mosaic_0001>

<bundles_post_ra>
// kernel: tpu_custom_call.1
= control target key start
LH: loop header
LB: loop body
LE: loop exit
PB: predicated region body
PF: predicated region fallthrough
CT: control target
= control target key end

     0   :  { %9 = vsyncpa [#allocation3], 0  ;;  %s1036_s0 = inlined_call_operand.hbm [shape: f32[16,128], index: 0, kind: input, shape index: {}]   ;;  %s1037_s1 = inlined_call_operand.hbm [shape: f32[16,128], index: 1, kind: input, shape index: {}]   ;;  %s1038_s2 = inlined_call_operand.hbm [shape: f32[2,8,128], index: 2, kind: output, shape index: {0}]   ;;  %s1039_s3 = inlined_call_operand.hbm [shape: f32[2,8,128], index: 3, kind: output, shape index: {1}]  }
   0x1   :  { %11 = vsyncpa [#allocation3 + $0x1], 0 }
   0x2   :  { %12 = vsyncpa [#allocation6], 0 }
   0x3   :  { %14 = vsyncpa [#allocation6 + $0x1], 0 }
   0x4   :  { %15 = vsyncpa [#allocation4], 0 }
   0x5   :  { %17 = vsyncpa [#allocation4 + $0x1], 0 }
   0x6   :  { %18 = vsyncpa [#allocation9], 0 }
   0x7   :  { %20 = vsyncpa [#allocation9 + $0x1], 0  ;;  %s768_s12 = smov 0   ;;  %s770_s13 = smov 0  }
   0x8   :  { %s772_s14 = smov 0   ;;  %s774_s15 = smov 0  }
   0x9   :  { %s776_s16 = smov 0   ;;  %s778_s17 = smov 0  }
   0xa LB: > { %s466_s18 = sadd.s32 4294967295, %s742_s17   ;;  %s467_s19 = sadd.s32 4294967294, %s742_s17   ;;  %s742_s17 = sphi %s778_s17, %s26_s17   ;;  %s738_s16 = sphi %s776_s16, %s1059_s16   ;;  %s734_s15 = sphi %s774_s15, %s1058_s15   ;;  %s730_s14 = sphi %s772_s14, %s1057_s14   ;;  %s726_s13 = sphi %s770_s13, %s1056_s13   ;;  %s722_s12 = sphi %s768_s12, %s1055_s12  }
   0xb   : > { %s38_s20 = sadd.s32 1, %s738_s16  ;;  %s47_s21 = sadd.s32 1, %s730_s14 }
   0xc   : > { %p40_p0 = scmp.ge.s32.totalorder %s38_s20, 2  ;;  %p54_p1 = scmp.ne.s32.totalorder %s730_s14, %s726_s13 }
   0xd   : > { %p55_p2 = scmp.eq.s32.totalorder %s742_s17, 0  ;;  %p60_p3 = scmp.ne.s32.totalorder %s726_s13, %s722_s12 }
   0xe   : > { %s1061_s20 = smov (%p40_p0, %s38_s20), 0  ;;  %p61_p5 = scmp.eq.s32.totalorder %s466_s18, 0 }
   0xf   : > { %p809_p4 = por %p55_p2, %p54_p1  ;;  %s44_s23 = ssub.s32 %s738_s16, %s1061_s20 }
  0x10   : > { %p112_p6 = scmp.eq.s32.totalorder %s466_s18, 1  ;;  %p45_p7 = scmp.eq.s32.totalorder %s44_s23, 0 }
  0x11   : > { %p815_p8 = por %p61_p5, %p60_p3  ;;  %p118_p10 = scmp.eq.s32.totalorder %s467_s19, 1 }
  0x12   : > { %p819_p9 = por %p112_p6, %p54_p1  ;;  %p507_p13 = scmp.lt.s32.totalorder %s742_s17, 2 }
  0x13   : > { %s1043_s24 = scalar_select %p815_p8, 1, 0 }
  0x14   : > { %s1044_s25 = scalar_select %p819_p9, 1, 0 }
  0x15   : > { %s824_s26 = scalar_select %p45_p7, %s730_s14, %s47_s21  }
  0x16   : > { %p826_p11 = por %p118_p10, %p60_p3  ;;  %s833_s28 = sand.u32 1, %s730_s14  }
  0x17   : > { %s470_s29 = sshll.u32 %s833_s28, 3  ;;  %s471_s30 = sshll.u32 %s738_s16, 7 }
  0x18   : > { %s1045_s27 = scalar_select %p826_p11, 1, 0 }
  0x19   : > { %s842_s6 = scalar_lea.hbm %s1036_s0, %s471_s30  ;;  %s168_s7 = scalar_lea.vmem [#allocation2], %s470_s29 }
  0x1a   : > { %s176_s8 = sshll.u32 %s168_s7, 4  ;;  %p850_p0 = pnand %p507_p13, %p809_p4  ;;  %s846_s8 = int_to_ptr.vmem [resolvable:$true] %s176_s8 }
  0x1b   : > { %s165_s10 = scalar_lea.sflag [#allocation3], %s833_s28  ;;  %s564_s11 = scalar_lea.hbm %s842_s6, 128 }
  0x1c   : > { %p565_p3 = scmp.ne.s32.totalorder %s842_s6, %s564_s11  ;;  %p566_p5 = pneg %p850_p0 }
  0x1d   : > { %s569_s21 = scalar_lea.hbm %s1036_s0, 256  ;;  %p570_p4 = scmp.lt.u32.totalorder %s842_s6, %s1036_s0 }
  0x1e   : > { %p567_p6 = pnand %p566_p5, %p565_p3  ;;  %p571_p10 = scmp.lt.u32.totalorder %s569_s21, %s564_s11 }
  0x1f   : > { %p573_p12 = scmp.lt.u32.totalorder %s564_s11, %s842_s6 }
  0x20   : > { %p568_p7 = pneg %p567_p6  ;;  %p572_p13 = por %p571_p10, %p570_p4 }
  0x22   : > { %p574_p1 = por %p573_p12, %p572_p13 }
  0x24   : > { %p575_p2 = pnand %p574_p1, %p568_p7 }
  0x26   : > { %578 = shalt.err (!%p575_p2)
}
  0x27   : > { %s579_s4 = scalar_lea.vmem %s846_s8, 128  ;;  %s744_s5 = smov [#allocation2]  }
  0x28   : > { %p580_p3 = scmp.ne.s32.totalorder %s846_s8, %s579_s4  ;;  %s584_s7 = sshll.u32 %s744_s5, 4  ;;  %s585_s7 = int_to_ptr.vmem [resolvable:$false] %s584_s7 }
  0x29   : > { %s586_s18 = scalar_lea.vmem %s585_s7, 256  ;;  %p587_p9 = scmp.lt.s32.totalorder %s846_s8, %s585_s7 }
  0x2a   : > { %p582_p6 = pnand %p580_p3, %p566_p5  ;;  %p588_p4 = scmp.lt.s32.totalorder %s586_s18, %s579_s4 }
  0x2c   : > { %p583_p11 = pneg %p582_p6  ;;  %p589_p10 = por %p588_p4, %p587_p9 }
  0x2e   : > { %p590_p12 = pnand %p589_p10, %p583_p11 }
  0x30   : > { %593 = shalt.err (!%p590_p12)
}
  0x31   : > { %496 = dma.hbm_to_vmem [thread:$0]  (!%p850_p0), %s842_s6, 128, %s846_s8, %s165_s10  }
  0x32   : > { %p1047_p1 = scmp.lt.s32.totalorder %s742_s17, 3  ;;  %p1048_p2 = scmp.ge.s32.totalorder %s742_s17, 1 }
  0x33   : > { %s895_s22 = scalar_lea.hbm %s1037_s1, %s471_s30  ;;  %s187_s23 = scalar_lea.vmem [#allocation5], %s470_s29 }
  0x34   : > { %p886_p7 = pnand %p1048_p2, %p1047_p1  ;;  %s195_s4 = sshll.u32 %s187_s23, 4  ;;  %s196_s4 = int_to_ptr.vmem [resolvable:$true] %s195_s4 }
  0x35   : > { %s184_s6 = scalar_lea.sflag [#allocation6], %s833_s28  ;;  %s594_s8 = scalar_lea.hbm %s895_s22, 128 }
  0x36   : > { %s1049_s11 = scalar_select %p886_p7, 1, 0 }
  0x37   : > { %p595_p9 = scmp.ne.s32.totalorder %s895_s22, %s594_s8  ;;  %s599_s30 = scalar_lea.hbm %s1037_s1, 256 }
  0x38   : > { %p600_p3 = scmp.lt.u32.totalorder %s895_s22, %s1037_s1  ;;  %p601_p6 = scmp.lt.u32.totalorder %s599_s30, %s594_s8 }
  0x39   : > { %p597_p11 = pnand %p595_p9, %p566_p5  ;;  %p603_p10 = scmp.lt.u32.totalorder %s594_s8, %s895_s22 }
  0x3a   : > { %p602_p4 = por %p601_p6, %p600_p3 }
  0x3b   : > { %p598_p13 = pneg %p597_p11 }
  0x3c   : > { %p604_p12 = por %p603_p10, %p602_p4 }
  0x3e   : > { %p605_p1 = pnand %p604_p12, %p598_p13 }
  0x40   : > { %608 = shalt.err (!%p605_p1)
}
  0x41   : > { %s609_s28 = scalar_lea.vmem %s196_s4, 128  ;;  %s745_s29 = smov [#allocation5]  }
  0x42   : > { %p610_p2 = scmp.ne.s32.totalorder %s196_s4, %s609_s28  ;;  %s614_s19 = sshll.u32 %s745_s29, 4  ;;  %s615_s19 = int_to_ptr.vmem [resolvable:$false] %s614_s19 }
  0x43   : > { %s616_s21 = scalar_lea.vmem %s615_s19, 256  ;;  %p617_p8 = scmp.lt.s32.totalorder %s196_s4, %s615_s19 }
  0x44   : > { %p612_p9 = pnand %p610_p2, %p566_p5  ;;  %p618_p7 = scmp.lt.s32.totalorder %s616_s21, %s609_s28 }
  0x46   : > { %p613_p11 = pneg %p612_p9  ;;  %p619_p3 = por %p618_p7, %p617_p8 }
  0x48   : > { %p620_p6 = pnand %p619_p3, %p613_p11 }
  0x4a   : > { %623 = shalt.err (!%p620_p6)
}
  0x4b   : > { %499 = dma.hbm_to_vmem [thread:$0]  (!%p850_p0), %s895_s22, 128, %s196_s4, %s184_s6  }
  0x4c   : > { %p1050_p13 = scmp.ne.s32.totalorder %s1049_s11, 0 }
  0x4d   : > { %s922_s23 = sand.u32 (!%p1050_p13), 1, %s726_s13   ;;  %p1051_p8 = scmp.ne.s32.totalorder (!%p1050_p13), %s1043_s24, 0 }
  0x4e   : > { %204 = sbr.rel (%p1050_p13) target bundleno = 167 (0xa7), region = 28  ;;  %s925_s8 = sshll.u32 (!%p1050_p13), %s922_s23, 3 }
  0x4f   : > { %s207_s10 = scalar_lea.sflag (!%p1050_p13), [#allocation3], %s922_s23  ;;  %s210_s5 = scalar_lea.vmem (!%p1050_p13), [#allocation2], %s925_s8 }
  0x55   : > { %705 = dma.done.wait (%p1051_p8), %s207_s10, 128  }
  0x56   : > { %707 = vsyncadd (%p1051_p8), %s207_s10, 4294967168  ;;  %s216_s9 = scalar_lea.sflag [#allocation6], %s922_s23  ;;  %s219_s11 = scalar_lea.vmem [#allocation5], %s925_s8 }
  0x57   : > { %709 = dma.done.wait (%p1051_p8), %s216_s9, 128  }
  0x58   : > { %711 = vsyncadd (%p1051_p8), %s216_s9, 4294967168  ;;  %v260_v0 = vld [vmem:[%s210_s5] sm:$0xff]  ;;  %s481_s24 = sshll.u32 %s734_s15, 7  ;;  %s251_s22 = scalar_lea.vmem [#allocation8], %s925_s8  ;;  %v261_v24 = vld [vmem:[%s219_s11] sm:$0xff] }
  0x59   : > { %v262_v1 = vand.u32 2147483647, %v260_v0  ;;  %vm283_vm0 = vcmp.ge.f32.partialorder %v260_v0, 0.0  ;;  %v266_v12 = vmax.f32 %v260_v0, 0.0  ;;  %s331_s4 = sshll.u32 %s251_s22, 4  ;;  %s948_s7 = scalar_lea.hbm %s1039_s3, %s481_s24  ;;  %s950_s4 = int_to_ptr.vmem [resolvable:$true] %s331_s4 }
  0x5a   : > { %s244_s18 = scalar_lea.vmem [#allocation7], %s925_s8  ;;  %s305_s29 = scalar_lea.sflag [#allocation9], %s922_s23 }
  0x5b   : > { %v263_v2 = vsub.f32 0.0, %v262_v1  ;;  %s955_s28 = sshll.u32 %s244_s18, 4  ;;  %s624_s19 = scalar_lea.vmem %s950_s4, 128  ;;  %s987_s28 = int_to_ptr.vmem [resolvable:$true] %s955_s28 }
  0x5c   : > { %p625_p0 = scmp.ne.s32.totalorder %s950_s4, %s624_s19  ;;  %p1052_p5 = scmp.ne.s32.totalorder %s1044_s25, 0 }
  0x5d   : > { %v264_v3 = vmul.f32 1.442695, %v263_v2  ;;  %s746_s21 = smov [#allocation8]  }
  0x5e   : > { %p626_p7 = pnand %p625_p0, %p1052_p5  ;;  %s628_s10 = sshll.u32 %s746_s21, 4  ;;  %s629_s10 = int_to_ptr.vmem [resolvable:$false] %s628_s10 }
  0x5f   : > { %558 = vpow2.f32 %v264_v3  ;;  %s630_s5 = scalar_lea.vmem %s629_s10, 256  ;;  %p631_p10 = scmp.lt.s32.totalorder %s950_s4, %s629_s10 }
  0x60   : > { %p627_p4 = pneg %p626_p7  ;;  %p632_p12 = scmp.lt.s32.totalorder %s630_s5, %s624_s19 }
  0x62   : > { %p633_p1 = por %p632_p12, %p631_p10 }
  0x64   : > { %p634_p2 = pnand %p633_p1, %p627_p4 }
  0x69   : > { %v559_v4 = vpop.eup %558 }
  0x6a   : > { %v267_v5 = vadd.f32 1.0, %v559_v4  ;;  %v270_v6 = vmul.f32 -0.5, %v559_v4  ;;  %v273_v8 = vand.u32 2147483647, %v559_v4  ;;  %v284_v10 = vsel %vm283_vm0, %v559_v4, 1.0 }
  0x6c   : > { %560 = vlog2.f32 %v267_v5  ;;  %v271_v7 = vadd.f32 1.0, %v270_v6  ;;  %vm274_vm1 = vcmp.lt.f32.partialorder %v273_v8, 0.0004427343 }
  0x6d   : > { %562 = vrcp.f32 %v267_v5 }
  0x6e   : > { %v272_v9 = vmul.f32 %v559_v4, %v271_v7 }
  0x76   : > { %v561_v11 = vpop.eup %560 }
  0x77   : > { %v563_v13 = vpop.eup %562  ;;  %v269_v14 = vmul.f32 0.6931472, %v561_v11 }
  0x78   : > { %v287_v15 = vmul.f32 %v563_v13, %v284_v10 }
  0x79   : > { %v275_v16 = vsel %vm274_vm1, %v272_v9, %v269_v14 }
  0x7a   : > { %v276_v17 = vadd.f32 %v275_v16, %v266_v12  ;;  %v288_v18 = vmax.f32 %v287_v15, 1e-07 }
  0x7c   : > { %v277_v19 = vsub.f32 %v276_v17, %v260_v0  ;;  %v279_v20 = vmin.f32 %v276_v17, 100.0  ;;  %v289_v21 = vmin.f32 %v288_v18, 0.9999999 }
  0x7e   : > { %v278_v22 = vmin.f32 %v277_v19, 100.0  ;;  %v290_v23 = vmul.f32 %v289_v21, %v289_v21 }
  0x80   : > { %v280_v25 = vsub.f32 %v278_v22, %v279_v20  ;;  %298 = vst [vmem:[%s251_s22] sm:$0xff] %v290_v23 }
  0x82   : > { %v281_v26 = vmul.f32 %v280_v25, %v261_v24 }
  0x83   : > { %637 = shalt.err (!%p634_p2)
}
  0x84   : > { %s638_s9 = scalar_lea.hbm %s948_s7, 128  ;;  %s642_s6 = scalar_lea.hbm %s1039_s3, 256 }
  0x85   : > { %p639_p9 = scmp.ne.s32.totalorder %s948_s7, %s638_s9  ;;  %p643_p6 = scmp.lt.u32.totalorder %s948_s7, %s1039_s3 }
  0x86   : > { %p644_p13 = scmp.lt.u32.totalorder %s642_s6, %s638_s9  ;;  %p646_p0 = scmp.lt.u32.totalorder %s638_s9, %s948_s7 }
  0x87   : > { %p640_p11 = pnand %p639_p9, %p1052_p5 }
  0x88   : > { %p645_p8 = por %p644_p13, %p643_p6 }
  0x89   : > { %p641_p3 = pneg %p640_p11 }
  0x8a   : > { %p647_p7 = por %p646_p0, %p645_p8 }
  0x8c   : > { %p648_p4 = pnand %p647_p7, %p641_p3 }
  0x8e   : > { %651 = shalt.err (!%p648_p4)
}
  0x8f   : > { %490 = dma.vmem_to_hbm [thread:$0]  (%p1052_p5), %s950_s4, 128, %s948_s7, %s305_s29   ;;  %v282_v27 = vadd.f32 %v281_v26, %v279_v20 }
  0x90   : > { %s984_s5 = scalar_lea.hbm %s1038_s2, %s481_s24  ;;  %s300_s9 = scalar_lea.sflag [#allocation4], %s922_s23 }
  0x91   : > { %294 = vst [vmem:[%s244_s18] sm:$0xff] %v282_v27  ;;  %s652_s11 = scalar_lea.vmem %s987_s28, 128  ;;  %s747_s4 = smov [#allocation7]  }
  0x92   : > { %p653_p10 = scmp.ne.s32.totalorder %s987_s28, %s652_s11  ;;  %s656_s15 = sshll.u32 %s747_s4, 4  ;;  %s657_s15 = int_to_ptr.vmem [resolvable:$false] %s656_s15 }
  0x93   : > { %s658_s7 = scalar_lea.vmem %s657_s15, 256  ;;  %p659_p2 = scmp.lt.s32.totalorder %s987_s28, %s657_s15 }
  0x94   : > { %p654_p12 = pnand %p653_p10, %p1052_p5  ;;  %p660_p9 = scmp.lt.s32.totalorder %s658_s7, %s652_s11 }
  0x96   : > { %p655_p1 = pneg %p654_p12  ;;  %p661_p11 = por %p660_p9, %p659_p2 }
  0x98   : > { %p662_p3 = pnand %p661_p11, %p655_p1 }
  0x9a   : > { %665 = shalt.err (!%p662_p3)
}
  0x9b   : > { %s666_s23 = scalar_lea.hbm %s984_s5, 128  ;;  %s670_s18 = scalar_lea.hbm %s1038_s2, 256 }
  0x9c   : > { %p667_p6 = scmp.ne.s32.totalorder %s984_s5, %s666_s23  ;;  %p671_p0 = scmp.lt.u32.totalorder %s984_s5, %s1038_s2 }
  0x9d   : > { %p672_p7 = scmp.lt.u32.totalorder %s670_s18, %s666_s23  ;;  %p674_p10 = scmp.lt.u32.totalorder %s666_s23, %s984_s5 }
  0x9e   : > { %p668_p13 = pnand %p667_p6, %p1052_p5 }
  0x9f   : > { %p673_p4 = por %p672_p7, %p671_p0 }
  0xa0   : > { %p669_p8 = pneg %p668_p13 }
  0xa1   : > { %p675_p12 = por %p674_p10, %p673_p4 }
  0xa3   : > { %p676_p1 = pnand %p675_p12, %p669_p8 }
  0xa5   : > { %679 = shalt.err (!%p676_p1)
}
  0xa6   : > { %489 = dma.vmem_to_hbm [thread:$0]  (%p1052_p5), %s987_s28, 128, %s984_s5, %s300_s9  }
  0xa7 PF: > { %s343_s6 = sand.u32 1, %s722_s12   ;;  %p1053_p2 = scmp.ne.s32.totalorder %s1045_s27, 0 }
  0xa8   : > { %p1054_p9 = scmp.ge.s32.totalorder %s742_s17, 2  ;;  %s344_s30 = scalar_lea.sflag [#allocation4], %s343_s6 }
  0xaa   : > { %p501_p11 = pnand %p1054_p9, %p1053_p2 }
  0xac   : > { %713 = dma.done.wait (!%p501_p11), %s344_s30, 128  }
  0xad   : > { %715 = vsyncadd (!%p501_p11), %s344_s30, 4294967168  ;;  %s353_s21 = scalar_lea.sflag [#allocation9], %s343_s6 }
  0xae   : > { %717 = dma.done.wait (!%p501_p11), %s353_s21, 128  }
  0xaf   : > { %719 = vsyncadd (!%p501_p11), %s353_s21, 4294967168  ;;  %s26_s17 = sadd.s32 1, %s742_s17   ;;  %s1055_s12 = smov %s726_s13 }
  0xb0   : > { %p23_p3 = scmp.ge.s32.totalorder %s26_s17, 4   ;;  %s1056_s13 = smov %s730_s14 }
  0xb1   : > { %s1057_s14 = smov %s824_s26  ;;  %s1058_s15 = smov %s738_s16 }
  0xb2   : > { %s1059_s16 = smov %s1061_s20  ;;  %25 = sbr.rel (!%p23_p3) target bundleno = 10 (0xa), region = 107 }
  0xb9   :  { %358 = vsyncpa [#allocation3], 1 }
  0xba   :  { %360 = vsyncpa [#allocation3 + $0x1], 1 }
  0xbb   :  { %361 = vsyncpa [#allocation6], 1 }
  0xbc   :  { %363 = vsyncpa [#allocation6 + $0x1], 1 }
  0xbd   :  { %364 = vsyncpa [#allocation4], 1 }
  0xbe   :  { %366 = vsyncpa [#allocation4 + $0x1], 1 }
  0xbf   :  { %367 = vsyncpa [#allocation9], 1 }
  0xc0   :  { %369 = vsyncpa [#allocation9 + $0x1], 1 }

</bundles_post_ra>
